<compile_context>
chip_gen: v7x
topology: tpu7x:2x2x1
jax: 0.10.0
libtpu: 0.0.40
codegen_flags: <defaults>
</compile_context>

<pallas_src>
import math
import functools

import jax
import jax.numpy as jnp
from jax.experimental import pallas as pl
from jax.experimental.pallas import tpu as pltpu


# -----------------------------------------------------------------------------
# Fused kernel: (K/V projection @ qi==0) + Q projection + single-pass softmax
# attention + output projection + LayerNorm.   grid = (B, num_q_tiles)
# -----------------------------------------------------------------------------
def _automha_kernel(q_ref, k_ref, v_ref, wq_ref, wk_ref, wv_ref, wo_ref,
                    gamma_ref, beta_ref, o_ref, k_sc, v_sc,
                    *, nhead_eff, head_dim, eps):
    bf16 = jnp.bfloat16
    qi = pl.program_id(1)
    tq = q_ref.shape[0]
    lk = k_ref.shape[0]

    @pl.when(qi == 0)
    def _project_kv():
        # Projected K/V for this batch element; stays resident in VMEM scratch
        # for every q-tile of this batch (qi is the innermost grid axis).
        kp = jnp.dot(k_ref[...].astype(bf16), wk_ref[...],
                     preferred_element_type=jnp.float32)           # (Lk, slice_w)
        vp = jnp.dot(v_ref[...].astype(bf16), wv_ref[...],
                     preferred_element_type=jnp.float32)           # (Lk, slice_w)
        # Head split: one VMEM relayout per batch element.
        k_sc[...] = jnp.transpose(
            kp.reshape(lk, nhead_eff, head_dim), (1, 0, 2)).astype(bf16)
        v_sc[...] = jnp.transpose(
            vp.reshape(lk, nhead_eff, head_dim), (1, 0, 2)).astype(bf16)

    # Fused, pre-scaled (1/sqrt(head_dim) folded into wq) Q projection.
    qp = jnp.dot(q_ref[...].astype(bf16), wq_ref[...],
                 preferred_element_type=jnp.float32)               # (tq, slice_w)
    qh = jnp.transpose(
        qp.reshape(tq, nhead_eff, head_dim), (1, 0, 2)).astype(bf16)   # (H,tq,hd)

    # Scores: contract on the last dims (no explicit K transpose), batched over
    # the head dim.  Single-pass softmax (the whole key length is in VMEM).
    s = jnp.einsum("hqd,hkd->hqk", qh, k_sc[...],
                   preferred_element_type=jnp.float32)             # (H, tq, Lk)
    m = jnp.max(s, axis=-1, keepdims=True)
    p = jnp.exp(s - m)
    l = jnp.sum(p, axis=-1, keepdims=True)
    ctx = jnp.einsum("hqk,hkd->hqd", p.astype(bf16), v_sc[...],
                     preferred_element_type=jnp.float32)           # (H, tq, hd)
    ctx = ctx * pl.reciprocal(l, approx=True)   # deferred normalization (EUP)
    # TODO(synk): attention mask and training-mode dropout not implemented.

    ctx = jnp.transpose(ctx, (1, 0, 2)).reshape(tq, nhead_eff * head_dim)
    out = jnp.dot(ctx.astype(bf16), wo_ref[...],
                  preferred_element_type=jnp.float32)              # (tq, d_model)

    # LayerNorm over d_model (biased variance, eps inside rsqrt), all in f32.
    mu = jnp.mean(out, axis=-1, keepdims=True)
    var = jnp.mean((out - mu) ** 2, axis=-1, keepdims=True)
    normed = (out - mu) * jax.lax.rsqrt(var + eps)
    o_ref[...] = (normed * gamma_ref[...] + beta_ref[...]).astype(o_ref.dtype)


# -----------------------------------------------------------------------------
# Wrapper
# -----------------------------------------------------------------------------
def _round_up(x, m):
    return ((x + m - 1) // m) * m


def automha_forward(query, key, value, params, *, nhead, d_model, d_trim,
                    max_tile_q=None):
    """query/key/value: (B, L, d_model). Returns (B, Lq, d_model)."""
    B, Lq, _ = query.shape
    _, Lk, _ = key.shape
    key_len = Lk
    head_dim = d_trim // nhead
    stage = (nhead // 4) * head_dim

    # Static slice-width / head-count selection (mirrors the torch branches).
    if key_len <= 512:
        n_mult = 1
    elif key_len <= 1024:
        n_mult = 2
    elif key_len <= 2048:
        n_mult = 3
    else:
        n_mult = 4
    slice_w = n_mult * stage
    nhead_eff = (nhead // 4) if key_len <= 256 else 2 * (nhead // 4)
    assert nhead_eff * head_dim == slice_w, (
        "only shape-consistent key_len branches are supported "
        "(key_len <= 256 or 512 < key_len <= 1024)")

    dt = query.dtype
    f32, bf16 = jnp.float32, jnp.bfloat16
    scale = 1.0 / math.sqrt(head_dim)

    # One-time weight folding (trim + sliced projection), bf16 MXU operands.
    wq_c = ((params["Q_trim"].T.astype(f32)
             @ params["WQ"][:, :slice_w].astype(f32)) * scale).astype(bf16)
    wk_c = (params["K_trim"].T.astype(f32)
            @ params["WK"][:, :slice_w].astype(f32)).astype(bf16)
    wv_c = (params["V_trim"].T.astype(f32)
            @ params["WV"][:, :slice_w].astype(f32)).astype(bf16)
    wo = params["WO"][:slice_w, :].astype(bf16)                    # (slice_w, d_model)
    gamma = params["ln_gamma"].reshape(1, d_model).astype(f32)
    beta = params["ln_beta"].reshape(1, d_model).astype(f32)

    # Generation-aware VMEM budget: v5e/v6e have 128 MiB physical, v7x 64 MiB.
    try:
        vmem_cap = pltpu.get_tpu_info().vmem_capacity_bytes
    except Exception:
        vmem_cap = 64 * 1024 * 1024          # conservative fallback
    vmem_limit = int(min(vmem_cap * 3 // 4, 100 * 1024 * 1024))

    # q-tile selection is independent of divisibility: pad Lq instead of
    # shrinking the tile (no tile=8 grid-overhead cliff for awkward lengths).
    if max_tile_q is None:
        max_tile_q = 512 if vmem_limit >= 64 * 1024 * 1024 else 256
    if Lq <= max_tile_q:
        tile_q = _round_up(Lq, 8)
    else:
        tile_q = max_tile_q                  # multiple of 128
    Lq_pad = _round_up(Lq, tile_q)
    q_in = query if Lq_pad == Lq else jnp.pad(
        query, ((0, 0), (0, Lq_pad - Lq), (0, 0)))
    nq = Lq_pad // tile_q

    kernel = functools.partial(_automha_kernel, nhead_eff=nhead_eff,
                               head_dim=head_dim, eps=1e-6)
    const = lambda b, qi: (0, 0)

    out = pl.pallas_call(
        kernel,
        out_shape=jax.ShapeDtypeStruct((B, Lq_pad, d_model), dt),
        grid=(B, nq),
        in_specs=[
            pl.BlockSpec((pl.Squeezed(), tile_q, d_model),
                         lambda b, qi: (b, qi, 0)),                 # query tile
            pl.BlockSpec((pl.Squeezed(), Lk, d_model),
                         lambda b, qi: (b, 0, 0)),                  # full key
            pl.BlockSpec((pl.Squeezed(), Lk, d_model),
                         lambda b, qi: (b, 0, 0)),                  # full value
            # TODO(synk): on v7x, pipeline_mode=pl.Buffered(1) on the constant
            # weight blocks below would reclaim their double-buffer VMEM;
            # omitted for portability across generations.
            pl.BlockSpec((d_model, slice_w), const),                # wq
            pl.BlockSpec((d_model, slice_w), const),                # wk
            pl.BlockSpec((d_model, slice_w), const),                # wv
            pl.BlockSpec((slice_w, d_model), const),                # wo
            pl.BlockSpec((1, d_model), const),                      # gamma
            pl.BlockSpec((1, d_model), const),                      # beta
        ],
        out_specs=pl.BlockSpec((pl.Squeezed(), tile_q, d_model),
                               lambda b, qi: (b, qi, 0)),
        scratch_shapes=[
            pltpu.VMEM((nhead_eff, Lk, head_dim), bf16),            # projected K
            pltpu.VMEM((nhead_eff, Lk, head_dim), bf16),            # projected V
        ],
        compiler_params=pltpu.CompilerParams(
            # B is independent (megacore-shardable on v7x); qi carries the
            # projected-K/V scratch within a batch element -> "arbitrary".
            dimension_semantics=("parallel", "arbitrary"),
            vmem_limit_bytes=vmem_limit),
    )(q_in, key, value, wq_c, wk_c, wv_c, wo, gamma, beta)

    if Lq_pad != Lq:
        out = out[:, :Lq, :]
    return out


# -----------------------------------------------------------------------------
# Pure-JAX f32 reference mirroring the PyTorch forward (eval-mode dropout).
# -----------------------------------------------------------------------------
def automha_reference(query, key, value, params, *, nhead, d_model, d_trim):
    key_len = key.shape[1]
    head_dim = d_trim // nhead
    stage = (nhead // 4) * head_dim
    n_mult = (1 if key_len <= 512 else 2 if key_len <= 1024
              else 3 if key_len <= 2048 else 4)
    slice_w = n_mult * stage
    nhead_eff = (nhead // 4) if key_len <= 256 else 2 * (nhead // 4)

    q = query @ params["Q_trim"].T
    k = key @ params["K_trim"].T
    v = value @ params["V_trim"].T
    Q = q @ params["WQ"][:, :slice_w]
    K = k @ params["WK"][:, :slice_w]
    V = v @ params["WV"][:, :slice_w]

    def shape(x):
        B = x.shape[0]
        return x.reshape(B, -1, nhead_eff, head_dim).transpose(0, 2, 1, 3)

    Qh, Kh, Vh = shape(Q), shape(K), shape(V)
    Qh = Qh / math.sqrt(head_dim)
    scores = jnp.einsum("bhqd,bhkd->bhqk", Qh, Kh)
    attn = jax.nn.softmax(scores, axis=-1)
    ctx = jnp.einsum("bhqk,bhkd->bhqd", attn, Vh)
    B = query.shape[0]
    ctx = ctx.transpose(0, 2, 1, 3).reshape(B, -1, nhead_eff * head_dim)
    out = ctx @ params["WO"][:slice_w, :]
    mu = out.mean(-1, keepdims=True)
    var = ((out - mu) ** 2).mean(-1, keepdims=True)
    normed = (out - mu) / jnp.sqrt(var + 1e-6)
    return normed * params["ln_gamma"] + params["ln_beta"]


if __name__ == "__main__":
    # Small deterministic config: d_model=128 keeps the output store lane-dense
    # and key_len = 8 exercises the key_len <= 256 branch (nhead_eff = nhead//4).
    nhead, d_model, d_trim = 8, 128, 128
    B, Lq, Lk = 2, 8, 8

    root = jax.random.PRNGKey(0)
    ks = jax.random.split(root, 12)
    params = {
        "Q_trim": jax.random.normal(ks[0], (d_trim, d_model), jnp.float32) * 0.1,
        "K_trim": jax.random.normal(ks[1], (d_trim, d_model), jnp.float32) * 0.1,
        "V_trim": jax.random.normal(ks[2], (d_trim, d_model), jnp.float32) * 0.1,
        "WQ": jax.random.normal(ks[3], (d_trim, d_trim), jnp.float32) * 0.05,
        "WK": jax.random.normal(ks[4], (d_trim, d_trim), jnp.float32) * 0.05,
        "WV": jax.random.normal(ks[5], (d_trim, d_trim), jnp.float32) * 0.1,
        "WO": jax.random.normal(ks[6], (d_trim, d_model), jnp.float32) * 0.1,
        "ln_gamma": 1.0 + 0.1 * jax.random.normal(ks[10], (d_model,), jnp.float32),
        "ln_beta": 0.1 * jax.random.normal(ks[11], (d_model,), jnp.float32),
    }

    query = jax.random.normal(ks[7], (B, Lq, d_model), jnp.float32)
    key_in = jax.random.normal(ks[8], (B, Lk, d_model), jnp.float32)
    value = jax.random.normal(ks[9], (B, Lk, d_model), jnp.float32)

    out = automha_forward(query, key_in, value, params,
                          nhead=nhead, d_model=d_model, d_trim=d_trim)
    out = jax.block_until_ready(out)
    assert out.shape == (B, Lq, d_model)

    ref = automha_reference(query, key_in, value, params,
                            nhead=nhead, d_model=d_model, d_trim=d_trim)
    # The kernel deliberately uses bf16 MXU operands (per the perf review),
    # folded weights and an approximate reciprocal, while the reference is
    # pure f32 — agreement is bounded by bf16 rounding (~0.4% per operand over
    # several matmuls, then scaled by the LayerNorm normalization).  Check a
    # max-abs bound plus a tighter relative-Frobenius bound.
    max_err = float(jnp.max(jnp.abs(out - ref)))
    rel_err = float(jnp.linalg.norm(out - ref) / jnp.linalg.norm(ref))
    assert max_err < 0.15 and rel_err < 0.05, (
        f"mismatch vs reference: max_abs={max_err:.4f} rel_fro={rel_err:.4f}")

    print("KERNEL_OK")
</pallas_src>

<mosaic_0001>
module attributes {stable_mosaic.version = 11 : i64} {
  func.func @_automha_kernel(%arg0: i32, %arg1: i32, %arg2: memref<1x8x128xf32, #tpu.memory_space<vmem>>, %arg3: memref<1x8x128xf32, #tpu.memory_space<vmem>>, %arg4: memref<1x8x128xf32, #tpu.memory_space<vmem>>, %arg5: memref<128x32xbf16, #tpu.memory_space<vmem>>, %arg6: memref<128x32xbf16, #tpu.memory_space<vmem>>, %arg7: memref<128x32xbf16, #tpu.memory_space<vmem>>, %arg8: memref<32x128xbf16, #tpu.memory_space<vmem>>, %arg9: memref<1x128xf32, #tpu.memory_space<vmem>>, %arg10: memref<1x128xf32, #tpu.memory_space<vmem>>, %arg11: memref<1x8x128xf32, #tpu.memory_space<vmem>>, %arg12: memref<2x8x16xbf16, #tpu.memory_space<vmem>>, %arg13: memref<2x8x16xbf16, #tpu.memory_space<vmem>>) attributes {dimension_semantics = [#tpu.dimension_semantics<parallel>, #tpu.dimension_semantics<arbitrary>], iteration_bounds = array<i64: 2, 1>, scalar_prefetch = 0 : i64, scratch_operands = 2 : i64, tpu.core_type = #tpu.core_type<tc>, window_params = [{transform_indices = @transform_0, window_bounds = array<i64: 1, 8, 128>}, {transform_indices = @transform_1, window_bounds = array<i64: 1, 8, 128>}, {transform_indices = @transform_2, window_bounds = array<i64: 1, 8, 128>}, {pipeline_mode = #tpu.pipeline_mode<synchronous>, transform_indices = @transform_3, window_bounds = array<i64: 128, 32>}, {pipeline_mode = #tpu.pipeline_mode<synchronous>, transform_indices = @transform_4, window_bounds = array<i64: 128, 32>}, {pipeline_mode = #tpu.pipeline_mode<synchronous>, transform_indices = @transform_5, window_bounds = array<i64: 128, 32>}, {pipeline_mode = #tpu.pipeline_mode<synchronous>, transform_indices = @transform_6, window_bounds = array<i64: 32, 128>}, {pipeline_mode = #tpu.pipeline_mode<synchronous>, transform_indices = @transform_7, window_bounds = array<i64: 1, 128>}, {pipeline_mode = #tpu.pipeline_mode<synchronous>, transform_indices = @transform_8, window_bounds = array<i64: 1, 128>}, {transform_indices = @transform_9, window_bounds = array<i64: 1, 8, 128>}]} {
    %c0_i32 = arith.constant 0 : i32
    %0 = arith.cmpi eq, %arg1, %c0_i32 : i32
    %1 = arith.extui %0 : i1 to i32
    %c0_i32_0 = arith.constant 0 : i32
    %2 = arith.cmpi ne, %1, %c0_i32_0 : i32
    scf.if %2 {
      %c0_30 = arith.constant 0 : index
      %c0_31 = arith.constant 0 : index
      %c0_32 = arith.constant 0 : index
      %58 = vector.load %arg3[%c0_30, %c0_31, %c0_32] : memref<1x8x128xf32, #tpu.memory_space<vmem>>, vector<1x8x128xf32>
      %59 = vector.shape_cast %58 : vector<1x8x128xf32> to vector<8x128xf32>
      %60 = arith.truncf %59 : vector<8x128xf32> to vector<8x128xbf16>
      %c0_33 = arith.constant 0 : index
      %c0_34 = arith.constant 0 : index
      %61 = vector.load %arg6[%c0_33, %c0_34] : memref<128x32xbf16, #tpu.memory_space<vmem>>, vector<128x32xbf16>
      %cst_35 = arith.constant dense<0.000000e+00> : vector<8x32xf32>
      %62 = tpu.matmul %60, %61, %cst_35 {dimension_numbers = #tpu.dot_dimension_numbers<[1], [0], [0], [1], [0, 0, 1, 1], [], []>} : vector<8x128xbf16>, vector<128x32xbf16>, vector<8x32xf32> -> vector<8x32xf32>
      %c0_36 = arith.constant 0 : index
      %c0_37 = arith.constant 0 : index
      %c0_38 = arith.constant 0 : index
      %63 = vector.load %arg4[%c0_36, %c0_37, %c0_38] : memref<1x8x128xf32, #tpu.memory_space<vmem>>, vector<1x8x128xf32>
      %64 = vector.shape_cast %63 : vector<1x8x128xf32> to vector<8x128xf32>
      %65 = arith.truncf %64 : vector<8x128xf32> to vector<8x128xbf16>
      %c0_39 = arith.constant 0 : index
      %c0_40 = arith.constant 0 : index
      %66 = vector.load %arg7[%c0_39, %c0_40] : memref<128x32xbf16, #tpu.memory_space<vmem>>, vector<128x32xbf16>
      %cst_41 = arith.constant dense<0.000000e+00> : vector<8x32xf32>
      %67 = tpu.matmul %65, %66, %cst_41 {dimension_numbers = #tpu.dot_dimension_numbers<[1], [0], [0], [1], [0, 0, 1, 1], [], []>} : vector<8x128xbf16>, vector<128x32xbf16>, vector<8x32xf32> -> vector<8x32xf32>
      %68 = vector.shape_cast %62 : vector<8x32xf32> to vector<8x2x16xf32>
      %69 = tpu.transpose %68, [1, 0, 2] : vector<8x2x16xf32> -> vector<2x8x16xf32>
      %70 = arith.truncf %69 : vector<2x8x16xf32> to vector<2x8x16xbf16>
      %c0_42 = arith.constant 0 : index
      %c0_43 = arith.constant 0 : index
      %c0_44 = arith.constant 0 : index
      %71 = vector.load %arg12[%c0_42, %c0_43, %c0_44] : memref<2x8x16xbf16, #tpu.memory_space<vmem>>, vector<2x8x16xbf16>
      tpu.vector_store %arg12[%c0_42, %c0_43, %c0_44], %70 {strides = array<i32>} : memref<2x8x16xbf16, #tpu.memory_space<vmem>>, vector<2x8x16xbf16>,
      %72 = vector.shape_cast %67 : vector<8x32xf32> to vector<8x2x16xf32>
      %73 = tpu.transpose %72, [1, 0, 2] : vector<8x2x16xf32> -> vector<2x8x16xf32>
      %74 = arith.truncf %73 : vector<2x8x16xf32> to vector<2x8x16xbf16>
      %c0_45 = arith.constant 0 : index
      %c0_46 = arith.constant 0 : index
      %c0_47 = arith.constant 0 : index
      %75 = vector.load %arg13[%c0_45, %c0_46, %c0_47] : memref<2x8x16xbf16, #tpu.memory_space<vmem>>, vector<2x8x16xbf16>
      tpu.vector_store %arg13[%c0_45, %c0_46, %c0_47], %74 {strides = array<i32>} : memref<2x8x16xbf16, #tpu.memory_space<vmem>>, vector<2x8x16xbf16>,
    } else {
    }
    %c0 = arith.constant 0 : index
    %c0_1 = arith.constant 0 : index
    %c0_2 = arith.constant 0 : index
    %3 = vector.load %arg2[%c0, %c0_1, %c0_2] : memref<1x8x128xf32, #tpu.memory_space<vmem>>, vector<1x8x128xf32>
    %4 = vector.shape_cast %3 : vector<1x8x128xf32> to vector<8x128xf32>
    %5 = arith.truncf %4 : vector<8x128xf32> to vector<8x128xbf16>
    %c0_3 = arith.constant 0 : index
    %c0_4 = arith.constant 0 : index
    %6 = vector.load %arg5[%c0_3, %c0_4] : memref<128x32xbf16, #tpu.memory_space<vmem>>, vector<128x32xbf16>
    %cst = arith.constant dense<0.000000e+00> : vector<8x32xf32>
    %7 = tpu.matmul %5, %6, %cst {dimension_numbers = #tpu.dot_dimension_numbers<[1], [0], [0], [1], [0, 0, 1, 1], [], []>} : vector<8x128xbf16>, vector<128x32xbf16>, vector<8x32xf32> -> vector<8x32xf32>
    %8 = vector.shape_cast %7 : vector<8x32xf32> to vector<8x2x16xf32>
    %9 = tpu.transpose %8, [1, 0, 2] : vector<8x2x16xf32> -> vector<2x8x16xf32>
    %10 = arith.truncf %9 : vector<2x8x16xf32> to vector<2x8x16xbf16>
    %c0_5 = arith.constant 0 : index
    %c0_6 = arith.constant 0 : index
    %c0_7 = arith.constant 0 : index
    %11 = vector.load %arg12[%c0_5, %c0_6, %c0_7] : memref<2x8x16xbf16, #tpu.memory_space<vmem>>, vector<2x8x16xbf16>
    "tpu.trace_start"() <{level = 10 : i32, message = "hqd,hkd->hqk"}> : () -> ()
    %cst_8 = arith.constant dense<0.000000e+00> : vector<2x8x8xf32>
    %12 = tpu.matmul %10, %11, %cst_8 {dimension_numbers = #tpu.dot_dimension_numbers<[2], [2], [1], [1], [0, 0, 0, 1, 1, 1], [0], [0]>} : vector<2x8x16xbf16>, vector<2x8x16xbf16>, vector<2x8x8xf32> -> vector<2x8x8xf32>
    "tpu.trace_stop"() : () -> ()
    %cst_9 = arith.constant dense<0xFF800000> : vector<2x8xf32>
    %13 = vector.multi_reduction <maximumf>, %12, %cst_9 [2] : vector<2x8x8xf32> to vector<2x8xf32>
    %14 = vector.shape_cast %13 : vector<2x8xf32> to vector<2x8x1xf32>
    %15 = vector.broadcast %14 : vector<2x8x1xf32> to vector<2x8x8xf32>
    %16 = arith.subf %12, %15 : vector<2x8x8xf32>
    %17 = math.exp %16 : vector<2x8x8xf32>
    %cst_10 = arith.constant dense<0.000000e+00> : vector<2x8xf32>
    %18 = vector.multi_reduction <add>, %17, %cst_10 [2] : vector<2x8x8xf32> to vector<2x8xf32>
    %19 = vector.shape_cast %18 : vector<2x8xf32> to vector<2x8x1xf32>
    %20 = arith.truncf %17 : vector<2x8x8xf32> to vector<2x8x8xbf16>
    %c0_11 = arith.constant 0 : index
    %c0_12 = arith.constant 0 : index
    %c0_13 = arith.constant 0 : index
    %21 = vector.load %arg13[%c0_11, %c0_12, %c0_13] : memref<2x8x16xbf16, #tpu.memory_space<vmem>>, vector<2x8x16xbf16>
    "tpu.trace_start"() <{level = 10 : i32, message = "hqk,hkd->hqd"}> : () -> ()
    %cst_14 = arith.constant dense<0.000000e+00> : vector<2x8x16xf32>
    %22 = tpu.matmul %20, %21, %cst_14 {dimension_numbers = #tpu.dot_dimension_numbers<[2], [1], [1], [2], [0, 0, 0, 1, 1, 2], [0], [0]>} : vector<2x8x8xbf16>, vector<2x8x16xbf16>, vector<2x8x16xf32> -> vector<2x8x16xf32>
    "tpu.trace_stop"() : () -> ()
    %23 = tpu.reciprocal %19 {approx = true} : vector<2x8x1xf32> -> vector<2x8x1xf32>
    %24 = vector.broadcast %23 : vector<2x8x1xf32> to vector<2x8x16xf32>
    %25 = arith.mulf %22, %24 : vector<2x8x16xf32>
    %26 = tpu.transpose %25, [1, 0, 2] : vector<2x8x16xf32> -> vector<8x2x16xf32>
    %27 = vector.shape_cast %26 : vector<8x2x16xf32> to vector<8x32xf32>
    %28 = arith.truncf %27 : vector<8x32xf32> to vector<8x32xbf16>
    %c0_15 = arith.constant 0 : index
    %c0_16 = arith.constant 0 : index
    %29 = vector.load %arg8[%c0_15, %c0_16] : memref<32x128xbf16, #tpu.memory_space<vmem>>, vector<32x128xbf16>
    %cst_17 = arith.constant dense<0.000000e+00> : vector<8x128xf32>
    %30 = tpu.matmul %28, %29, %cst_17 {dimension_numbers = #tpu.dot_dimension_numbers<[1], [0], [0], [1], [0, 0, 1, 1], [], []>} : vector<8x32xbf16>, vector<32x128xbf16>, vector<8x128xf32> -> vector<8x128xf32>
    %cst_18 = arith.constant dense<0.000000e+00> : vector<8xf32>
    %31 = vector.multi_reduction <add>, %30, %cst_18 [1] : vector<8x128xf32> to vector<8xf32>
    %32 = vector.shape_cast %31 : vector<8xf32> to vector<8x1xf32>
    %cst_19 = arith.constant 1.280000e+02 : f32
    %33 = vector.broadcast %cst_19 : f32 to vector<8x1xf32>
    %34 = arith.divf %32, %33 : vector<8x1xf32>
    %35 = vector.broadcast %34 : vector<8x1xf32> to vector<8x128xf32>
    %36 = arith.subf %30, %35 : vector<8x128xf32>
    %37 = arith.mulf %36, %36 : vector<8x128xf32>
    %cst_20 = arith.constant dense<0.000000e+00> : vector<8xf32>
    %38 = vector.multi_reduction <add>, %37, %cst_20 [1] : vector<8x128xf32> to vector<8xf32>
    %39 = vector.shape_cast %38 : vector<8xf32> to vector<8x1xf32>
    %cst_21 = arith.constant 1.280000e+02 : f32
    %40 = vector.broadcast %cst_21 : f32 to vector<8x1xf32>
    %41 = arith.divf %39, %40 : vector<8x1xf32>
    %42 = vector.broadcast %34 : vector<8x1xf32> to vector<8x128xf32>
    %43 = arith.subf %30, %42 : vector<8x128xf32>
    %cst_22 = arith.constant 9.99999997E-7 : f32
    %44 = vector.broadcast %cst_22 : f32 to vector<8x1xf32>
    %45 = arith.addf %41, %44 : vector<8x1xf32>
    %46 = math.rsqrt %45 : vector<8x1xf32>
    %47 = vector.broadcast %46 : vector<8x1xf32> to vector<8x128xf32>
    %48 = arith.mulf %43, %47 : vector<8x128xf32>
    %c0_23 = arith.constant 0 : index
    %c0_24 = arith.constant 0 : index
    %49 = vector.load %arg9[%c0_23, %c0_24] : memref<1x128xf32, #tpu.memory_space<vmem>>, vector<1x128xf32>
    %50 = vector.broadcast %49 : vector<1x128xf32> to vector<8x128xf32>
    %51 = arith.mulf %48, %50 : vector<8x128xf32>
    %c0_25 = arith.constant 0 : index
    %c0_26 = arith.constant 0 : index
    %52 = vector.load %arg10[%c0_25, %c0_26] : memref<1x128xf32, #tpu.memory_space<vmem>>, vector<1x128xf32>
    %53 = vector.broadcast %52 : vector<1x128xf32> to vector<8x128xf32>
    %54 = arith.addf %51, %53 : vector<8x128xf32>
    %c0_27 = arith.constant 0 : index
    %c0_28 = arith.constant 0 : index
    %c0_29 = arith.constant 0 : index
    %55 = vector.load %arg11[%c0_27, %c0_28, %c0_29] : memref<1x8x128xf32, #tpu.memory_space<vmem>>, vector<1x8x128xf32>
    %56 = vector.shape_cast %55 : vector<1x8x128xf32> to vector<8x128xf32>
    %57 = vector.shape_cast %54 : vector<8x128xf32> to vector<1x8x128xf32>
    tpu.vector_store %arg11[%c0_27, %c0_28, %c0_29], %57 {strides = array<i32>} : memref<1x8x128xf32, #tpu.memory_space<vmem>>, vector<1x8x128xf32>,
    return
  }
  func.func @transform_0(%arg0: i32, %arg1: i32) -> (i32, i32, i32) {
    %c0_i32 = arith.constant 0 : i32
    %c0_i32_0 = arith.constant 0 : i32
    return %arg0, %arg1, %c0_i32 : i32, i32, i32
  }
  func.func @transform_1(%arg0: i32, %arg1: i32) -> (i32, i32, i32) {
    %c0_i32 = arith.constant 0 : i32
    %c0_i32_0 = arith.constant 0 : i32
    %c0_i32_1 = arith.constant 0 : i32
    return %arg0, %c0_i32, %c0_i32_0 : i32, i32, i32
  }
  func.func @transform_2(%arg0: i32, %arg1: i32) -> (i32, i32, i32) {
    %c0_i32 = arith.constant 0 : i32
    %c0_i32_0 = arith.constant 0 : i32
    %c0_i32_1 = arith.constant 0 : i32
    return %arg0, %c0_i32, %c0_i32_0 : i32, i32, i32
  }
  func.func @transform_3(%arg0: i32, %arg1: i32) -> (i32, i32) {
    %c0_i32 = arith.constant 0 : i32
    %c0_i32_0 = arith.constant 0 : i32
    %c0_i32_1 = arith.constant 0 : i32
    return %c0_i32, %c0_i32_0 : i32, i32
  }
  func.func @transform_4(%arg0: i32, %arg1: i32) -> (i32, i32) {
    %c0_i32 = arith.constant 0 : i32
    %c0_i32_0 = arith.constant 0 : i32
    %c0_i32_1 = arith.constant 0 : i32
    return %c0_i32, %c0_i32_0 : i32, i32
  }
  func.func @transform_5(%arg0: i32, %arg1: i32) -> (i32, i32) {
    %c0_i32 = arith.constant 0 : i32
    %c0_i32_0 = arith.constant 0 : i32
    %c0_i32_1 = arith.constant 0 : i32
    return %c0_i32, %c0_i32_0 : i32, i32
  }
  func.func @transform_6(%arg0: i32, %arg1: i32) -> (i32, i32) {
    %c0_i32 = arith.constant 0 : i32
    %c0_i32_0 = arith.constant 0 : i32
    %c0_i32_1 = arith.constant 0 : i32
    return %c0_i32, %c0_i32_0 : i32, i32
  }
  func.func @transform_7(%arg0: i32, %arg1: i32) -> (i32, i32) {
    %c0_i32 = arith.constant 0 : i32
    %c0_i32_0 = arith.constant 0 : i32
    %c0_i32_1 = arith.constant 0 : i32
    return %c0_i32, %c0_i32_0 : i32, i32
  }
  func.func @transform_8(%arg0: i32, %arg1: i32) -> (i32, i32) {
    %c0_i32 = arith.constant 0 : i32
    %c0_i32_0 = arith.constant 0 : i32
    %c0_i32_1 = arith.constant 0 : i32
    return %c0_i32, %c0_i32_0 : i32, i32
  }
  func.func @transform_9(%arg0: i32, %arg1: i32) -> (i32, i32, i32) {
    %c0_i32 = arith.constant 0 : i32
    %c0_i32_0 = arith.constant 0 : i32
    return %arg0, %arg1, %c0_i32 : i32, i32, i32
  }
}

</mosaic_0001>

<bundles_post_ra>
// kernel: tpu_custom_call.1
= control target key start
LH: loop header
LB: loop body
LE: loop exit
PB: predicated region body
PF: predicated region fallthrough
CT: control target
= control target key end

     0   :  { %s2378_s0 = inlined_call_operand.vmem [shape: f32[2,8,128], index: 0, kind: input, shape index: {}]   ;;  %s2379_s1 = inlined_call_operand.vmem [shape: f32[2,8,128], index: 1, kind: input, shape index: {}]   ;;  %s2380_s2 = inlined_call_operand.vmem [shape: f32[2,8,128], index: 2, kind: input, shape index: {}]   ;;  %s2381_s3 = inlined_call_operand.vmem [shape: bf16[128,32], index: 3, kind: input, shape index: {}]   ;;  %s2382_s4 = inlined_call_operand.vmem [shape: bf16[128,32], index: 4, kind: input, shape index: {}]   ;;  %s2383_s5 = inlined_call_operand.vmem [shape: bf16[128,32], index: 5, kind: input, shape index: {}]   ;;  %s2384_s6 = inlined_call_operand.vmem [shape: bf16[32,128], index: 6, kind: input, shape index: {}]   ;;  %s2385_s7 = inlined_call_operand.vmem [shape: f32[1,128], index: 7, kind: input, shape index: {}]   ;;  %s2386_s8 = inlined_call_operand.vmem [shape: f32[1,128], index: 8, kind: input, shape index: {}]   ;;  %s2387_s9 = inlined_call_operand.hbm [shape: f32[2,8,128], index: 9, kind: output, shape index: {}]  }
   0x1   :  { %2388 = sst [smem:[#allocation7_spill]] %s2378_s0 }
   0x2   :  { %14 = vsyncpa [#allocation5], 0 }
   0x3   :  { %16 = vsyncpa [#allocation5 + $0x1], 0  ;;  %s2035_s30 = smov 0   ;;  %s2037_s10 = smov 0  }
   0x4   :  { %s2039_s11 = smov 0   ;;  %s2041_s12 = smov 0  }
   0x5   :  { %s2043_s13 = smov 0   ;;  %s2045_s14 = smov 0  }
   0x6 LB: > { %s1617_s15 = sadd.s32 4294967295, %s1976_s14   ;;  %s1618_s16 = sadd.s32 4294967294, %s1976_s14   ;;  %s1976_s14 = sphi %s2045_s14, %s22_s14   ;;  %s1972_s13 = sphi %s2043_s13, %s2396_s13   ;;  %s1968_s12 = sphi %s2041_s12, %s2395_s12   ;;  %s1964_s11 = sphi %s2039_s11, %s2394_s11   ;;  %s1960_s10 = sphi %s2037_s10, %s2393_s10   ;;  %s1956_s30 = sphi %s2035_s30, %s2392_s30  }
   0x7   : > { %s34_s17 = sadd.s32 1, %s1972_s13  ;;  %s249_s18 = sadd.s32 1, %s1964_s11 }
   0x8   : > { %p36_p0 = scmp.ge.s32.totalorder %s34_s17, 2  ;;  %p259_p1 = scmp.ne.s32.totalorder %s1964_s11, %s1960_s10 }
   0x9   : > { %p260_p2 = scmp.eq.s32.totalorder %s1617_s15, 1  ;;  %p265_p3 = scmp.ne.s32.totalorder %s1960_s10, %s1956_s30 }
   0xa   : > { %s2398_s17 = smov (%p36_p0, %s34_s17), 0  ;;  %p266_p5 = scmp.eq.s32.totalorder %s1618_s16, 1 }
   0xb   : > { %p2075_p4 = por %p260_p2, %p259_p1  ;;  %s244_s20 = ssub.s32 %s1972_s13, %s2398_s17 }
   0xc   : > { %p1621_p6 = scmp.ge.s32.totalorder %s1976_s14, 1  ;;  %p247_p7 = scmp.eq.s32.totalorder %s244_s20, 0 }
   0xd   : > { %p2082_p8 = por %p266_p5, %p265_p3  ;;  %p326_p9 = scmp.lt.s32.totalorder %s1976_s14, 3 }
   0xe   : > { %s2088_s22 = scalar_select %p247_p7, %s1964_s11, %s249_s18  }
   0xf   : > { %p327_p10 = pnand %p1621_p6, %p326_p9 }
  0x10   : > { %v1862_v0 = vld [vmem:[%s2382_s4] sm:$0xff] (!%p327_p10)   ;;  %v1978_v1 = vmov (!%p327_p10), 0.0   ;;  %v1863_v2 = vld [vmem:[%s2382_s4 + $0x8] sm:$0xff] (!%p327_p10)   ;;  %vm1979_vm0 = vmmov (!%p327_p10), 0   ;;  %v1864_v3 = vld [vmem:[%s2382_s4 + $0x10] sm:$0xff] (!%p327_p10)   ;;  %p372_p11 = scmp.lt.s32.totalorder (!%p327_p10), %s1968_s12, 1  ;;  %v612_v45 = vlaneseq (!%p327_p10) }
  0x11   : > { %330 = sbr.rel (%p327_p10) target bundleno = 1695 (0x69f), region = 56  ;;  %1709 = vmatprep.subr.bf16.mxu0 (!%p327_p10), %v1978_v1  ;;  %1729 = vmatprep.subr.bf16.mxu1 (!%p327_p10), %v1978_v1  ;;  %v1865_v4 = vld [vmem:[%s2382_s4 + $0x18] sm:$0xff] (!%p327_p10)   ;;  %v1866_v5 = vld [vmem:[%s2382_s4 + $0x20] sm:$0xff] (!%p327_p10)   ;;  %v1867_v7 = vld [vmem:[%s2382_s4 + $0x28] sm:$0xff] (!%p327_p10)   ;;  %s2391_s0 = sld [smem:[#allocation7_spill]] (!%p327_p10)  ;;  %vm726_vm1 = vcmask (!%p327_p10), 125952  }
  0x12   : > { %1710 = vmatpush3.bf16.msra.mxu0 (!%p327_p10), %v1862_v0  ;;  %1725 = vmatprep.mubr.msk.bf16.mxu0 (!%p327_p10), %vm1979_vm0, %v1978_v1  ;;  %v1878_v6 = vld [vmem:[%s2383_s5] sm:$0xff] (!%p327_p10)   ;;  %v1879_v8 = vld [vmem:[%s2383_s5 + $0x8] sm:$0xff] (!%p327_p10)   ;;  %v1868_v9 = vld [vmem:[%s2382_s4 + $0x30] sm:$0xff] (!%p327_p10)   ;;  %s1980_s15 = smov (!%p327_p10), 112   ;;  %v1981_v43 = vmov (!%p327_p10), 1983009808  }
  0x13   : > { %1711 = vmatprep.subr.bf16.mxu0 (!%p327_p10), %v1978_v1  ;;  %1745 = vmatprep.mubr.msk.bf16.mxu1 (!%p327_p10), %vm1979_vm0, %v1978_v1  ;;  %v1880_v10 = vld [vmem:[%s2383_s5 + $0x10] sm:$0xff] (!%p327_p10)   ;;  %v1869_v11 = vld [vmem:[%s2382_s4 + $0x38] sm:$0xff] (!%p327_p10)   ;;  %v1870_v15 = vld [vmem:[%s2381_s3] sm:$0xff] (!%p327_p10)   ;;  %v610_v44 = vunpack.c.l.s4 (!%p327_p10), %v1981_v43  ;;  %v613_v47 = vshrl.u32 (!%p327_p10), %v612_v45, 7  ;;  %v1982_v48 = vmov (!%p327_p10), 1934713408  }
  0x14   : > { %1730 = vmatpush3.bf16.msra.mxu1 (!%p327_p10), %v1878_v6  ;;  %v1881_v13 = vld [vmem:[%s2383_s5 + $0x18] sm:$0xff] (!%p327_p10)   ;;  %v1871_v16 = vld [vmem:[%s2381_s3 + $0x8] sm:$0xff] (!%p327_p10)   ;;  %v1872_v17 = vld [vmem:[%s2381_s3 + $0x10] sm:$0xff] (!%p327_p10)   ;;  %v641_v49 = vunpack.c.l.s4 (!%p327_p10), %v1982_v48  ;;  %vm1083_vm2 = vcmask (!%p327_p10), 130048   ;;  %vm1202_vm3 = vcmask (!%p327_p10), 1043456   ;;  %vm1176_vm4 = vcmask (!%p327_p10), 64512  }
  0x15   : > { %1731 = vmatprep.subr.bf16.mxu1 (!%p327_p10), %v1978_v1  ;;  %v1873_v18 = vld [vmem:[%s2381_s3 + $0x18] sm:$0xff] (!%p327_p10)   ;;  %v1874_v19 = vld [vmem:[%s2381_s3 + $0x20] sm:$0xff] (!%p327_p10)   ;;  %v1875_v20 = vld [vmem:[%s2381_s3 + $0x28] sm:$0xff] (!%p327_p10)   ;;  %v611_v46 = vunpack.c.0.s8 (!%p327_p10), %v610_v44  ;;  %s1983_s25 = smov (!%p327_p10), 16   ;;  %vm1434_vm5 = vcmask (!%p327_p10), 261120  }
  0x16   : > { %1712 = vmatpush3.bf16.msra.mxu0 (!%p327_p10), %v1863_v2  ;;  %v1876_v21 = vld [vmem:[%s2381_s3 + $0x30] sm:$0xff] (!%p327_p10)   ;;  %v1877_v22 = vld [vmem:[%s2381_s3 + $0x38] sm:$0xff] (!%p327_p10)   ;;  %v1882_v25 = vld [vmem:[%s2383_s5 + $0x20] sm:$0xff] (!%p327_p10)   ;;  %v642_v51 = vunpack.c.0.s8 (!%p327_p10), %v641_v49 }
  0x17   : > { %1713 = vmatprep.subr.bf16.mxu0 (!%p327_p10), %v1978_v1  ;;  %v1883_v26 = vld [vmem:[%s2383_s5 + $0x28] sm:$0xff] (!%p327_p10)   ;;  %v1884_v27 = vld [vmem:[%s2383_s5 + $0x30] sm:$0xff] (!%p327_p10)   ;;  %v1885_v28 = vld [vmem:[%s2383_s5 + $0x38] sm:$0xff] (!%p327_p10)   ;;  %v2217_v50 = vsub.s32 (!%p327_p10), %v611_v46, %v613_v47 }
  0x18   : > { %s373_s20 = scalar_select %p372_p11, %s1968_s12, 1  ;;  %1732 = vmatpush3.bf16.msra.mxu1 %v1879_v8  ;;  %v2221_v55 = vsub.s32 %v642_v51, %v613_v47 }
  0x19   : > { %1733 = vmatprep.subr.bf16.mxu1 %v1978_v1 }
  0x1a   : > { %1714 = vmatpush3.bf16.msra.mxu0 %v1864_v3  ;;  %s2130_s16 = sshll.u32 %s373_s20, 3 }
  0x1b   : > { %1715 = vmatprep.subr.bf16.mxu0 %v1978_v1  ;;  %s382_s26 = scalar_lea.vmem %s2379_s1, %s2130_s16  ;;  %s378_s20 = scalar_lea.vmem %s2391_s0, %s2130_s16 }
  0x1c   : > { %v392_v12 = vld [vmem:[%s382_s26] sm:$0xff]  ;;  %1734 = vmatpush3.bf16.msra.mxu1 %v1880_v10  ;;  %s386_s27 = scalar_lea.vmem %s2380_s2, %s2130_s16  ;;  %s369_s26 = sand.u32 1, %s1960_s10  }
  0x1d   : > { %1735 = vmatprep.subr.bf16.mxu1 %v1978_v1  ;;  %v393_v14 = vpack.c.bf16 %v392_v12, %v392_v12  ;;  %v853_v23 = vld [vmem:[%s378_s20] sm:$0xff]  ;;  %s1622_s20 = sshll.u32 %s369_s26, 3  ;;  %s1668_s16 = sshll.u32 %s1968_s12, 7 }
  0x1e   : > { %1716 = vmatpush3.bf16.msra.mxu0 %v1865_v4  ;;  %v854_v24 = vpack.c.bf16 %v853_v23, %v853_v23  ;;  %v498_v29 = vld [vmem:[%s386_s27] sm:$0xff]  ;;  %s371_s18 = scalar_lea.vmem [#allocation4], %s1622_s20  ;;  %s2331_s0 = scalar_lea.hbm %s2387_s9, %s1668_s16 }
  0x1f   : > { %1717 = vmatprep.subr.bf16.mxu0 %v1978_v1  ;;  %v499_v30 = vpack.c.bf16 %v498_v29, %v498_v29  ;;  %s1522_s23 = sshll.u32 %s371_s18, 4  ;;  %s1508_s27 = scalar_lea.sflag [#allocation5], %s369_s26  ;;  %s2333_s23 = int_to_ptr.vmem [resolvable:$true] %s1522_s23 }
  0x20   : > { %1736 = vmatpush3.bf16.msra.mxu1 %v1881_v13  ;;  %s1898_s28 = scalar_lea.vmem %s2333_s23, 128  ;;  %s1984_s12 = smov [#allocation4]  }
  0x21   : > { %1737 = vmatprep.subr.bf16.mxu1 %v1978_v1  ;;  %p1899_p12 = scmp.ne.s32.totalorder %s2333_s23, %s1898_s28  ;;  %s1902_s20 = sshll.u32 %s1984_s12, 4  ;;  %s1903_s20 = int_to_ptr.vmem [resolvable:$false] %s1902_s20 }
  0x22   : > { %1718 = vmatpush3.bf16.msra.mxu0 %v1866_v5  ;;  %s1904_s29 = scalar_lea.vmem %s1903_s20, 256  ;;  %p1905_p1 = scmp.lt.s32.totalorder %s2333_s23, %s1903_s20 }
  0x23   : > { %1719 = vmatprep.subr.bf16.mxu0 %v1978_v1  ;;  %p1900_p13 = pnand %p1899_p12, %p2075_p4  ;;  %p1906_p2 = scmp.lt.s32.totalorder %s1904_s29, %s1898_s28 }
  0x24   : > { %1738 = vmatpush3.bf16.msra.mxu1 %v1882_v25 }
  0x25   : > { %1739 = vmatprep.subr.bf16.mxu1 %v1978_v1  ;;  %p1901_p0 = pneg %p1900_p13  ;;  %p1907_p3 = por %p1906_p2, %p1905_p1 }
  0x26   : > { %1720 = vmatpush3.bf16.msra.mxu0 %v1867_v7 }
  0x27   : > { %1721 = vmatprep.subr.bf16.mxu0 %v1978_v1  ;;  %p1908_p5 = pnand %p1907_p3, %p1901_p0 }
  0x28   : > { %1740 = vmatpush3.bf16.msra.mxu1 %v1883_v26 }
  0x29   : > { %1741 = vmatprep.subr.bf16.mxu1 %v1978_v1 }
  0x2a   : > { %1722 = vmatpush3.bf16.msra.mxu0 %v1868_v9 }
  0x2b   : > { %1723 = vmatprep.subr.bf16.mxu0 %v1978_v1 }
  0x2c   : > { %1742 = vmatpush3.bf16.msra.mxu1 %v1884_v27 }
  0x2d   : > { %1743 = vmatprep.subr.bf16.mxu1 %v1978_v1 }
  0x2e   : > { %1724 = vmatpush3.bf16.msra.mxu0 %v1869_v11 }
  0x2f   : > { %1749 = vmatprep.subr.bf16.mxu0 %v1978_v1 }
  0x30   : > { %1744 = vmatpush3.bf16.msra.mxu1 %v1885_v28 }
  0x31   : > { %1726 = vmatmul.mubr.bf16.vlgmr.msra.gmra.mrb[0].mxu0 %v393_v14  ;;  %1769 = vmatprep.subr.bf16.mxu1 %v1978_v1 }
  0x32   : > { %1750 = vmatpush3.bf16.msra.mxu0 %v1870_v15  ;;  %1765 = vmatprep.mubr.msk.bf16.mxu0 %vm1979_vm0, %v1978_v1 }
  0x33   : > { %1751 = vmatprep.subr.bf16.mxu0 %v1978_v1  ;;  %1746 = vmatmul.mubr.bf16.vlgmr.msra.gmra.mrb[0].mxu1 %v499_v30 }
  0x34   : > { %1771 = vmatprep.mubr.msk.bf16.mxu1 %vm1979_vm0, %v1978_v1 }
  0x36   : > { %1752 = vmatpush3.bf16.msra.mxu0 %v1871_v16 }
  0x37   : > { %1753 = vmatprep.subr.bf16.mxu0 %v1978_v1 }
  0x3a   : > { %1754 = vmatpush3.bf16.msra.mxu0 %v1872_v17 }
  0x3b   : > { %1755 = vmatprep.subr.bf16.mxu0 %v1978_v1 }
  0x3e   : > { %1756 = vmatpush3.bf16.msra.mxu0 %v1873_v18 }
  0x3f   : > { %1757 = vmatprep.subr.bf16.mxu0 %v1978_v1 }
  0x42   : > { %1758 = vmatpush3.bf16.msra.mxu0 %v1874_v19 }
  0x43   : > { %1759 = vmatprep.subr.bf16.mxu0 %v1978_v1 }
  0x46   : > { %1760 = vmatpush3.bf16.msra.mxu0 %v1875_v20 }
  0x47   : > { %1761 = vmatprep.subr.bf16.mxu0 %v1978_v1 }
  0x4a   : > { %1762 = vmatpush3.bf16.msra.mxu0 %v1876_v21 }
  0x4b   : > { %1763 = vmatprep.subr.bf16.mxu0 %v1978_v1 }
  0x4e   : > { %1764 = vmatpush3.bf16.msra.mxu0 %v1877_v22 }
  0x4f   : > { %1793 = vmatprep.subr.bf16.mxu0 %v1978_v1 }
  0x51   : > { %1766 = vmatmul.mubr.bf16.vlgmr.msra.gmra.mrb[4].mxu0 %v854_v24 }
  0x52   : > { %1797 = vmatprep.mubr.msk.bf16.mxu0 %vm1979_vm0, %v1978_v1 }
 0x104   : > { %v492_v31 = vpop.f32.mrb[0].mxu0 }
 0x105   : > { %605 = vrot.lane.b32.xlu0 %v492_v31, %s1980_s15  ;;  %v1727_v32 = vpop.f32.mrb[1].mxu0  ;;  %v608_v52 = vcombine.high %v492_v31, %v1978_v1  ;;  %v615_v54 = vrot.slane %v492_v31, %v2217_v50 }
 0x106   : > { %v495_v33 = vpop.f32.mrb[2].mxu0  ;;  %v2214_v39 = vpop.f32.mrb[0].mxu1 }
 0x107   : > { %v1728_v34 = vpop.f32.mrb[3].mxu0  ;;  %730 = vrot.lane.b32.xlu1 %v2214_v39, %s1980_s15  ;;  %v1747_v40 = vpop.f32.mrb[1].mxu1  ;;  %v622_v58 = vrot.slane %v608_v52, %v2217_v50 }
 0x108   : > { %v601_v41 = vpop.f32.mrb[2].mxu1 }
 0x109   : > { %v1748_v42 = vpop.f32.mrb[3].mxu1 }
 0x124   : > { %v953_v35 = vpop.f32.mrb[4].mxu0 }
 0x125   : > { %960 = vrot.lane.b32.xlu0 %v953_v35, %s1980_s15  ;;  %v1767_v36 = vpop.f32.mrb[5].mxu0  ;;  %v963_v23 = vcombine.high %v953_v35, %v1978_v1  ;;  %v970_v25 = vrot.slane %v953_v35, %v2217_v50 }
 0x126   : > { %v956_v37 = vpop.f32.mrb[6].mxu0 }
 0x127   : > { %v1768_v38 = vpop.f32.mrb[7].mxu0  ;;  %v977_v28 = vrot.slane %v963_v23, %v2217_v50 }
 0x177   : > { %v606_v53 = vpop.permute.xlu0 %605 }
 0x178   : > { %v623_v56 = vcombine.high %v606_v53, %v1978_v1  ;;  %v630_v57 = vrot.slane %v606_v53, %v2217_v50 }
 0x17a   : > { %v637_v59 = vrot.slane %v623_v56, %v2217_v50  ;;  %v638_v60 = vcombine.low %v615_v54, %v630_v57  ;;  %v639_v61 = vcombine.high %v615_v54, %v630_v57 }
 0x17c   : > { %v646_v62 = vrot.slane %v638_v60, %v2221_v55  ;;  %v653_v63 = vrot.slane %v639_v61, %v2221_v55  ;;  %v654_v0 = vcombine.low %v622_v58, %v637_v59  ;;  %v655_v2 = vcombine.high %v622_v58, %v637_v59  ;;  %v731_v61 = vpop.permute.xlu1 %730 }
 0x17d   : > { %v733_v59 = vcombine.high %v2214_v39, %v1978_v1  ;;  %v740_v60 = vrot.slane %v2214_v39, %v2217_v50 }
 0x17e   : > { %v662_v3 = vrot.slane %v654_v0, %v2221_v55  ;;  %v669_v4 = vrot.slane %v655_v2, %v2221_v55  ;;  %v674_v5 = vcombine.low %v646_v62, %v653_v63  ;;  %v1642_v6 = vcombine.high %v646_v62, %v653_v63 }
 0x17f   : > { %v747_v62 = vrot.slane %v733_v59, %v2217_v50  ;;  %v748_v63 = vcombine.high %v731_v61, %v1978_v1  ;;  %v755_v0 = vrot.slane %v731_v61, %v2217_v50 }
 0x180   : > { %v681_v7 = vrot.slane %v674_v5, %v2217_v50  ;;  %v689_v8 = vrot.slane %v1642_v6, %v2217_v50  ;;  %v690_v9 = vcombine.low %v662_v3, %v669_v4  ;;  %v1643_v10 = vcombine.high %v662_v3, %v669_v4 }
 0x181   : > { %v762_v2 = vrot.slane %v748_v63, %v2217_v50  ;;  %v763_v3 = vcombine.low %v740_v60, %v755_v0  ;;  %v764_v4 = vcombine.high %v740_v60, %v755_v0 }
 0x182   : > { %v697_v11 = vrot.slane %v690_v9, %v2217_v50  ;;  %v705_v12 = vrot.slane %v1643_v10, %v2217_v50  ;;  %v706_v13 = vcombine.low %v681_v7, %v689_v8 }
 0x183   : > { %v771_v5 = vrot.slane %v763_v3, %v2221_v55  ;;  %v778_v6 = vrot.slane %v764_v4, %v2221_v55  ;;  %v779_v7 = vcombine.low %v747_v62, %v762_v2  ;;  %v780_v8 = vcombine.high %v747_v62, %v762_v2 }
 0x184   : > { %v714_v14 = vcombine.low %v697_v11, %v705_v12  ;;  %v713_v15 = vrot.slane %v706_v13, %v2221_v55 }
 0x185   : > { %v787_v9 = vrot.slane %v779_v7, %v2221_v55  ;;  %v794_v39 = vrot.slane %v780_v8, %v2221_v55  ;;  %v799_v10 = vcombine.low %v771_v5, %v778_v6  ;;  %v1644_v11 = vcombine.high %v771_v5, %v778_v6 }
 0x186   : > { %v721_v16 = vrot.slane %v714_v14, %v2221_v55 }
 0x187   : > { %v806_v12 = vrot.slane %v799_v10, %v2217_v50  ;;  %v814_v13 = vrot.slane %v1644_v11, %v2217_v50  ;;  %v815_v14 = vcombine.low %v787_v9, %v794_v39 }
 0x188   : > { %v722_v17 = vcombine.low %v713_v15, %v721_v16  ;;  %v723_v18 = vcombine.high %v713_v15, %v721_v16  ;;  %v1645_v15 = vcombine.high %v787_v9, %v794_v39 }
 0x189   : > { %v822_v16 = vrot.slane %v815_v14, %v2217_v50 }
 0x18a   : > { %v724_v19 = vpack.c.bf16 %v722_v17, %v722_v17  ;;  %v725_v20 = vpack.c.bf16 %v723_v18, %v723_v18  ;;  %v830_v17 = vrot.slane %v1645_v15, %v2217_v50  ;;  %v831_v18 = vcombine.low %v806_v12, %v814_v13 }
 0x18c   : > { %727 = vst.msk [vmem:[#allocation2] sm:$0xf] %vm726_vm1, %v724_v19  ;;  %728 = vst.msk [vmem:[#allocation2 + $0x4] sm:$0xf] %vm726_vm1, %v725_v20  ;;  %v838_v19 = vrot.slane %v831_v18, %v2221_v55  ;;  %v839_v20 = vcombine.low %v822_v16, %v830_v17 }
 0x193   : > { %v1081_v21 = vld [vmem:[#allocation2] sm:$0xf]  ;;  %v1082_v53 = vld [vmem:[#allocation2 + $0x4] sm:$0xf] }
 0x194   : > { %v1088_v22 = vsel %vm1083_vm2, %v1081_v21, 0  ;;  %v1134_v56 = vsel %vm1083_vm2, %v1082_v53, 0  ;;  %v846_v21 = vrot.slane %v839_v20, %v2221_v55 }
 0x195   : > { %1770 = vmatpush3.bf16.xpose.msra.mxu1 %v1088_v22 }
 0x196   : > { %1775 = vmatprep.subr.bf16.mxu1 %v1978_v1  ;;  %v847_v22 = vcombine.low %v838_v19, %v846_v21  ;;  %v848_v23 = vcombine.high %v838_v19, %v846_v21 }
 0x197   : > { %v961_v24 = vpop.permute.xlu0 %960 }
 0x198   : > { %v978_v26 = vcombine.high %v961_v24, %v1978_v1  ;;  %v985_v27 = vrot.slane %v961_v24, %v2217_v50  ;;  %v849_v24 = vpack.c.bf16 %v847_v22, %v847_v22 }
 0x19a   : > { %v992_v29 = vrot.slane %v978_v26, %v2217_v50  ;;  %v993_v30 = vcombine.low %v970_v25, %v985_v27  ;;  %v994_v31 = vcombine.high %v970_v25, %v985_v27  ;;  %v850_v25 = vpack.c.bf16 %v848_v23, %v848_v23  ;;  %851 = vst.msk [vmem:[#allocation3] sm:$0xf] %vm726_vm1, %v849_v24 }
 0x19c   : > { %v1001_v32 = vrot.slane %v993_v30, %v2221_v55  ;;  %v1008_v33 = vrot.slane %v994_v31, %v2221_v55  ;;  %v1009_v34 = vcombine.low %v977_v28, %v992_v29  ;;  %v1010_v36 = vcombine.high %v977_v28, %v992_v29  ;;  %852 = vst.msk [vmem:[#allocation3 + $0x4] sm:$0xf] %vm726_vm1, %v850_v25 }
 0x19e   : > { %v1017_v37 = vrot.slane %v1009_v34, %v2221_v55  ;;  %v1024_v35 = vrot.slane %v1010_v36, %v2221_v55  ;;  %v1029_v38 = vcombine.low %v1001_v32, %v1008_v33  ;;  %v1654_v40 = vcombine.high %v1001_v32, %v1008_v33 }
 0x1a0   : > { %v1036_v41 = vrot.slane %v1029_v38, %v2217_v50  ;;  %v1044_v42 = vrot.slane %v1654_v40, %v2217_v50  ;;  %v1045_v43 = vcombine.low %v1017_v37, %v1024_v35  ;;  %v1655_v44 = vcombine.high %v1017_v37, %v1024_v35 }
 0x1a1   : > { %v1197_v26 = vld [vmem:[#allocation3] sm:$0xf] }
 0x1a2   : > { %v1052_v45 = vrot.slane %v1045_v43, %v2217_v50  ;;  %v1060_v46 = vrot.slane %v1655_v44, %v2217_v50  ;;  %v1061_v47 = vcombine.low %v1036_v41, %v1044_v42  ;;  %v1204_v27 = vsel %vm1202_vm3, %v1197_v26, 0 }
 0x1a4   : > { %v1069_v48 = vcombine.low %v1052_v45, %v1060_v46  ;;  %v1068_v49 = vrot.slane %v1061_v47, %v2221_v55  ;;  %v1198_v46 = vld [vmem:[#allocation3 + $0x4] sm:$0xf] }
 0x1a6   : > { %v1076_v51 = vrot.slane %v1069_v48, %v2221_v55 }
 0x1a8   : > { %v1077_v52 = vcombine.low %v1068_v49, %v1076_v51  ;;  %v1078_v57 = vcombine.high %v1068_v49, %v1076_v51  ;;  %v1250_v49 = vsel %vm1202_vm3, %v1198_v46, 0 }
 0x1aa   : > { %v1079_v54 = vpack.c.bf16 %v1077_v52, %v1077_v52  ;;  %v1080_v58 = vpack.c.bf16 %v1078_v57, %v1078_v57 }
 0x1ac   : > { %1772 = vmatmul.mubr.msk.bf16.vlgmr.msra.gmra.mrb[4].mxu1 %vm1083_vm2, %v1079_v54  ;;  %v1886_v54 = vld [vmem:[%s2384_s6] sm:$0xff]  }
 0x1ad   : > { %1776 = vmatpush3.bf16.xpose.msra.mxu1 %v1134_v56  ;;  %1777 = vmatprep.mubr.msk.bf16.mxu1 %vm1979_vm0, %v1978_v1  ;;  %v1887_v56 = vld [vmem:[%s2384_s6 + $0x8] sm:$0xff]  }
 0x1ae   : > { %1781 = vmatprep.subr.bf16.mxu1 %v1978_v1  ;;  %1794 = vmatpush3.bf16.msra.mxu0 %v1886_v54 }
 0x1af   : > { %1795 = vmatprep.subr.bf16.mxu0 %v1978_v1 }
 0x1b2   : > { %1796 = vmatpush3.bf16.msra.mxu0 %v1887_v56 }
 0x1b4   : > { %1778 = vmatmul.mubr.msk.bf16.vlgmr.msra.gmra.mrb[8].mxu1 %vm1083_vm2, %v1080_v58 }
 0x1b5   : > { %1783 = vmatprep.mubr.msk.bf16.mxu1 %vm1979_vm0, %v1978_v1  ;;  %1782 = vmatpush3.bf16.msra.mxu1 %v1204_v27 }
 0x1b6   : > { %1787 = vmatprep.subr.bf16.mxu1 %v1978_v1 }
 0x27f   : > { %v1124_v28 = vpop.f32.mrb[4].mxu1 }
 0x280   : > { %v1773_v29 = vpop.f32.mrb[5].mxu1  ;;  %v1177_v30 = vsel %vm1176_vm4, %v1124_v28, -inf }
 0x281   : > { %1178 = vmax.xlane.f32.xlu1 %v1177_v30  ;;  %v1127_v31 = vpop.f32.mrb[6].mxu1 }
 0x282   : > { %v1774_v32 = vpop.f32.mrb[7].mxu1 }
 0x287   : > { %v1170_v33 = vpop.f32.mrb[8].mxu1 }
 0x288   : > { %v1779_v34 = vpop.f32.mrb[9].mxu1  ;;  %v1180_v36 = vsel %vm1176_vm4, %v1170_v33, -inf }
 0x289   : > { %1181 = vmax.xlane.f32.xlu0 %v1180_v36  ;;  %v1173_v37 = vpop.f32.mrb[10].mxu1 }
 0x28a   : > { %v1780_v35 = vpop.f32.mrb[11].mxu1 }
 0x30e   : > { %v1179_v38 = vpop.xlane.xlu1 %1178 }
 0x30f   : > { %v1183_v40 = vsub.f32 %v1124_v28, %v1179_v38 }
 0x311   : > { %v1185_v41 = vmul.f32 1.442695, %v1183_v40 }
 0x313   : > { %1888 = vpow2.f32 %v1185_v41 }
 0x316   : > { %v1182_v42 = vpop.xlane.xlu0 %1181 }
 0x317   : > { %v1184_v43 = vsub.f32 %v1170_v33, %v1182_v42 }
 0x319   : > { %v1187_v44 = vmul.f32 1.442695, %v1184_v43 }
 0x31b   : > { %1890 = vpow2.f32 %v1187_v44 }
 0x31d   : > { %v1889_v45 = vpop.eup %1888 }
 0x31e   : > { %v1189_v47 = vsel %vm1176_vm4, %v1889_v45, 0.0  ;;  %v1195_v48 = vpack.c.bf16 %v1889_v45, %v1889_v45 }
 0x31f   : > { %1190 = vadd.xlane.f32.xlu0 %v1189_v47 }
 0x320   : > { %1784 = vmatmul.mubr.msk.bf16.vlgmr.msra.gmra.mrb[12].mxu1 %vm1176_vm4, %v1195_v48  ;;  %v1665_v48 = vld [vmem:[%s2385_s7] ss:$0 sm:$0xff] }
 0x321   : > { %1788 = vmatpush3.bf16.msra.mxu1 %v1250_v49  ;;  %1789 = vmatprep.mubr.msk.bf16.mxu1 %vm1979_vm0, %v1978_v1 }
 0x325   : > { %v1891_v51 = vpop.eup %1890 }
 0x326   : > { %v1192_v52 = vsel %vm1176_vm4, %v1891_v51, 0.0  ;;  %v1196_v53 = vpack.c.bf16 %v1891_v51, %v1891_v51  ;;  %v1666_v51 = vld [vmem:[%s2386_s8] ss:$0 sm:$0xff] }
 0x327   : > { %1193 = vadd.xlane.f32.xlu1 %v1192_v52 }
 0x328   : > { %1790 = vmatmul.mubr.msk.bf16.vlgmr.msra.gmra.mrb[16].mxu1 %vm1176_vm4, %v1196_v53 }
 0x3ac   : > { %v1191_v57 = vpop.xlane.xlu0 %1190 }
 0x3ad   : > { %1892 = vrcp.f32 %v1191_v57 }
 0x3b4   : > { %v1194_v58 = vpop.xlane.xlu1 %1193 }
 0x3b5   : > { %1894 = vrcp.f32 %v1194_v58 }
 0x3b7   : > { %v1893_v63 = vpop.eup %1892 }
 0x3bf   : > { %v1895_v2 = vpop.eup %1894 }
 0x3f3   : > { %v1240_v59 = vpop.f32.mrb[12].mxu1 }
 0x3f4   : > { %v1785_v60 = vpop.f32.mrb[13].mxu1  ;;  %v1294_v0 = vmul.f32 %v1893_v63, %v1240_v59 }
 0x3f5   : > { %v1243_v61 = vpop.f32.mrb[14].mxu1 }
 0x3f6   : > { %v1786_v62 = vpop.f32.mrb[15].mxu1  ;;  %v1296_v4 = vcombine.high %v1294_v0, %v1978_v1  ;;  %v1303_v8 = vrot.slane %v1294_v0, %v2217_v50 }
 0x3f8   : > { %v1310_v11 = vrot.slane %v1296_v4, %v2217_v50 }
 0x3fb   : > { %v1286_v3 = vpop.f32.mrb[16].mxu1 }
 0x3fc   : > { %v1295_v5 = vmul.f32 %v1895_v2, %v1286_v3  ;;  %v1791_v6 = vpop.f32.mrb[17].mxu1 }
 0x3fd   : > { %v1289_v7 = vpop.f32.mrb[18].mxu1 }
 0x3fe   : > { %v1311_v9 = vcombine.high %v1295_v5, %v1978_v1  ;;  %v1318_v39 = vrot.slane %v1295_v5, %v2217_v50  ;;  %v1792_v10 = vpop.f32.mrb[19].mxu1 }
 0x400   : > { %v1325_v12 = vrot.slane %v1311_v9, %v2217_v50  ;;  %v1326_v13 = vcombine.low %v1303_v8, %v1318_v39  ;;  %v1327_v14 = vcombine.high %v1303_v8, %v1318_v39 }
 0x402   : > { %v1334_v15 = vrot.slane %v1326_v13, %v2221_v55  ;;  %v1341_v16 = vrot.slane %v1327_v14, %v2221_v55  ;;  %v1342_v17 = vcombine.low %v1310_v11, %v1325_v12  ;;  %v1343_v18 = vcombine.high %v1310_v11, %v1325_v12 }
 0x404   : > { %v1350_v19 = vrot.slane %v1342_v17, %v2221_v55  ;;  %v1357_v20 = vrot.slane %v1343_v18, %v2221_v55  ;;  %v1362_v1 = vcombine.low %v1334_v15, %v1341_v16  ;;  %v1660_v21 = vcombine.high %v1334_v15, %v1341_v16 }
 0x406   : > { %v1378_v22 = vcombine.low %v1350_v19, %v1357_v20  ;;  %v1661_v23 = vcombine.high %v1350_v19, %v1357_v20  ;;  %v1369_v24 = vrot.slane %v1362_v1, %v2217_v50  ;;  %v1377_v25 = vrot.slane %v1660_v21, %v2217_v50 }
 0x408   : > { %v1385_v26 = vrot.slane %v1378_v22, %v2217_v50  ;;  %v1393_v27 = vrot.slane %v1661_v23, %v2217_v50  ;;  %v1394_v28 = vcombine.low %v1369_v24, %v1377_v25 }
 0x40a   : > { %v1402_v29 = vcombine.low %v1385_v26, %v1393_v27  ;;  %v1401_v30 = vrot.slane %v1394_v28, %v2221_v55 }
 0x40c   : > { %v1409_v31 = vrot.slane %v1402_v29, %v2221_v55 }
 0x40e   : > { %v1411_v32 = vcombine.high %v1401_v30, %v1409_v31  ;;  %v1410_v33 = vcombine.low %v1401_v30, %v1409_v31 }
 0x410   : > { %1413 = vrot.lane.b32.xlu0 %v1411_v32, %s1983_s25 }
 0x482   : > { %v1414_v34 = vpop.permute.xlu0 %1413 }
 0x483   : > { %v1416_v36 = vsel %vm1083_vm2, %v1410_v33, %v1414_v34 }
 0x484   : > { %v1417_v37 = vpack.c.bf16 %v1416_v36, %v1416_v36 }
 0x486   : > { %1798 = vmatmul.mubr.msk.bf16.vlgmr.msra.gmra.mrb[8].mxu0 %vm1434_vm5, %v1417_v37 }
 0x559   : > { %v1472_v35 = vpop.f32.mrb[8].mxu0 }
 0x55a   : > { %1478 = vadd.xlane.f32.xlu1 %v1472_v35  ;;  %v1799_v50 = vpop.f32.mrb[9].mxu0 }
 0x55b   : > { %v1475_v38 = vpop.f32.mrb[10].mxu0 }
 0x55c   : > { %v1800_v40 = vpop.f32.mrb[11].mxu0 }
 0x5e7   : > { %v1479_v41 = vpop.xlane.xlu1 %1478 }
 0x5e8   : > { %v1481_v42 = vmul.f32 0.0078125, %v1479_v41 }
 0x5ea   : > { %v1482_v55 = vsub.f32 %v1472_v35, %v1481_v42 }
 0x5ec   : > { %v1483_v43 = vmul.f32 %v1482_v55, %v1482_v55 }
 0x5ee   : > { %1484 = vadd.xlane.f32.xlu1 %v1483_v43 }
 0x67b   : > { %v1485_v44 = vpop.xlane.xlu1 %1484 }
 0x67c   : > { %v1486_v45 = vmul.f32 0.0078125, %v1485_v44 }
 0x67e   : > { %v1487_v46 = vadd.f32 1e-06, %v1486_v45 }
 0x680   : > { %1896 = vrsqrt.f32 %v1487_v46 }
 0x68a   : > { %v1897_v47 = vpop.eup %1896 }
 0x68b   : > { %v1489_v49 = vmul.f32 %v1897_v47, %v1482_v55 }
 0x68d   : > { %v1497_v52 = vmul.f32 %v1665_v48, %v1489_v49 }
 0x68f   : > { %v1505_v53 = vadd.f32 %v1666_v51, %v1497_v52 }
 0x691   : > { %1506 = vst [vmem:[%s371_s18] sm:$0xff] %v1505_v53 }
 0x692   : > { %1911 = shalt.err (!%p1908_p5)
}
 0x693   : > { %s1912_s26 = scalar_lea.hbm %s2331_s0, 128  ;;  %s1916_s18 = scalar_lea.hbm %s2387_s9, 256 }
 0x694   : > { %p1913_p6 = scmp.ne.s32.totalorder %s2331_s0, %s1912_s26  ;;  %p1917_p10 = scmp.lt.u32.totalorder %s2331_s0, %s2387_s9 }
 0x695   : > { %p1918_p11 = scmp.lt.u32.totalorder %s1916_s18, %s1912_s26  ;;  %p1920_p13 = scmp.lt.u32.totalorder %s1912_s26, %s2331_s0 }
 0x696   : > { %p1914_p7 = pnand %p1913_p6, %p2075_p4 }
 0x697   : > { %p1919_p12 = por %p1918_p11, %p1917_p10 }
 0x698   : > { %p1915_p9 = pneg %p1914_p7 }
 0x699   : > { %p1921_p0 = por %p1920_p13, %p1919_p12 }
 0x69b   : > { %p1922_p1 = pnand %p1921_p0, %p1915_p9 }
 0x69d   : > { %1925 = shalt.err (!%p1922_p1)
}
 0x69e   : > { %1801 = dma.vmem_to_hbm [thread:$0]  (%p2075_p4), %s2333_s23, 128, %s2331_s0, %s1508_s27  }
 0x69f PF: > { %p1807_p2 = scmp.ge.s32.totalorder %s1976_s14, 2  ;;  %s1534_s28 = sand.u32 1, %s1956_s30  }
 0x6a0   : > { %s1535_s12 = scalar_lea.sflag [#allocation5], %s1534_s28 }
 0x6a1   : > { %p1804_p3 = pnand %p1807_p2, %p2082_p8 }
 0x6a3   : > { %1951 = dma.done.wait (!%p1804_p3), %s1535_s12, 128  }
 0x6a4   : > { %1953 = vsyncadd (!%p1804_p3), %s1535_s12, 4294967168  ;;  %s22_s14 = sadd.s32 1, %s1976_s14   ;;  %s2392_s30 = smov %s1960_s10 }
 0x6a5   : > { %p19_p5 = scmp.ge.s32.totalorder %s22_s14, 4   ;;  %s2393_s10 = smov %s1964_s11 }
 0x6a6   : > { %s2394_s11 = smov %s2088_s22  ;;  %s2395_s12 = smov %s1972_s13 }
 0x6a7   : > { %s2396_s13 = smov %s2398_s17  ;;  %21 = sbr.rel (!%p19_p5) target bundleno = 6 (0x6), region = 101 }
 0x6ae   :  { %1540 = vsyncpa [#allocation5], 1 }
 0x6af   :  { %1542 = vsyncpa [#allocation5 + $0x1], 1 }

</bundles_post_ra>
